<compile_context>
chip_gen: v7x
topology: tpu7x:2x2x1
jax: 0.10.0
libtpu: 0.0.40
codegen_flags: <defaults>
</compile_context>

<pallas_src>
import jax
import jax.numpy as jnp
from jax.experimental import pallas as pl
from jax.experimental.pallas import tpu as pltpu


def _round_up(x, m):
    return ((x + m - 1) // m) * m


def _logreg_kernel(x_ref, wt_ref, b_ref, o_ref):
    # x_ref: (TILE_B, F) VMEM | wt_ref: (F, 1) VMEM | b_ref: (1,) SMEM
    # o_ref: (TILE_B, 1) VMEM
    # GEMV on the MXU: K-reduction internal to the systolic array, no XLU.
    z = jnp.dot(x_ref[...], wt_ref[...], preferred_element_type=jnp.float32)
    z = z + b_ref[0]
    # sigmoid(z) = 0.5 * tanh(0.5 z) + 0.5  -> single EUP op, no approx-recip error.
    o_ref[...] = (0.5 * jnp.tanh(0.5 * z) + 0.5).astype(o_ref.dtype)


def _pick_tile_b(batch, n_features):
    """Byte-based row-tile size.

    Target ~6 MiB per x tile (double-buffered that is 12 MiB: inside v5e's
    16 MiB scoped default and well inside v6e/v7x budgets), but keep the grid
    >= ~8 steps when the batch allows so v7x's two TensorCores both get work,
    and never drop below ~1 MiB/tile (per-step overhead floor).
    """
    bytes_per_row = max(1, n_features) * 4
    target_rows = max(8, (6 * 1024 * 1024 // bytes_per_row) // 8 * 8)
    min_rows = max(8, (1 * 1024 * 1024 // bytes_per_row) // 8 * 8)
    rows_for_8_steps = _round_up(pl.cdiv(batch, 8), 8)
    tile = min(target_rows, max(min_rows, rows_for_8_steps))
    # Never exceed the (sublane-rounded) batch itself.
    tile = min(tile, _round_up(batch, 8))
    return max(8, tile)


def logreg_forward(x, w, b):
    """x: (B, F) f32, w: (1, F) f32 (nn.Linear weight), b: (1,) f32 -> (B, 1) f32."""
    B, F = x.shape
    assert w.shape == (1, F) and b.shape == (1,)

    tile_b = _pick_tile_b(B, F)
    grid = (pl.cdiv(B, tile_b),)  # ragged last block handled by Pallas; no jnp.pad

    out = pl.pallas_call(
        _logreg_kernel,
        out_shape=jax.ShapeDtypeStruct((B, 1), jnp.float32),
        grid=grid,
        in_specs=[
            pl.BlockSpec((tile_b, F), lambda i: (i, 0)),          # x row-tile (double-buffered)
            pl.BlockSpec((F, 1), lambda i: (0, 0)),               # W^T column, resident in VMEM
            pl.BlockSpec(memory_space=pltpu.MemorySpace.SMEM),    # bias scalar in SMEM
        ],
        out_specs=pl.BlockSpec((tile_b, 1), lambda i: (i, 0)),
        compiler_params=pltpu.CompilerParams(
            dimension_semantics=("parallel",),       # v7x: shard tiles across its 2 TCs
            vmem_limit_bytes=32 * 1024 * 1024,       # headroom over v5e's 16 MiB scoped default
        ),
    )(x, w.T.astype(jnp.float32), b.astype(jnp.float32))
    return out


if __name__ == "__main__":
    key = jax.random.PRNGKey(0)
    kx, kw, kb = jax.random.split(key, 3)

    batch, n_features = 8, 32
    x = jax.random.normal(kx, (batch, n_features), dtype=jnp.float32)

    # nn.Linear(n_features, 1)-style parameters: weight (1, F), bias (1,)
    bound = 1.0 / (n_features ** 0.5)
    w = jax.random.uniform(kw, (1, n_features), jnp.float32, -bound, bound)
    b = jax.random.uniform(kb, (1,), jnp.float32, -bound, bound)

    # Small-shape run (single tile).
    y = logreg_forward(x, w, b)
    jax.block_until_ready(y)
    y_ref = jax.nn.sigmoid(x @ w.T + b)
    assert y.shape == (batch, 1)
    # MXU default precision on f32 inputs is bf16-ish -> modest tolerance.
    assert jnp.allclose(y, y_ref, atol=2e-3, rtol=2e-3)

    # Larger run: multi-step grid + ragged (non-tile-aligned) last block, no padding copy.
    big_batch = 20000
    xb = jax.random.normal(kx, (big_batch, n_features), dtype=jnp.float32)
    yb = logreg_forward(xb, w, b)
    jax.block_until_ready(yb)
    yb_ref = jax.nn.sigmoid(xb @ w.T + b)
    assert yb.shape == (big_batch, 1)
    assert jnp.allclose(yb, yb_ref, atol=2e-3, rtol=2e-3)

    print("KERNEL_OK")
</pallas_src>

<mosaic_0001>
module attributes {stable_mosaic.version = 11 : i64} {
  func.func @_logreg_kernel(%arg0: i32, %arg1: memref<8x32xf32, #tpu.memory_space<vmem>>, %arg2: memref<32x1xf32, #tpu.memory_space<vmem>>, %arg3: memref<1xf32, #tpu.memory_space<smem>>, %arg4: memref<8x1xf32, #tpu.memory_space<vmem>>) attributes {dimension_semantics = [#tpu.dimension_semantics<parallel>], iteration_bounds = array<i64: 1>, scalar_prefetch = 0 : i64, scratch_operands = 0 : i64, tpu.core_type = #tpu.core_type<tc>, window_params = [{transform_indices = @transform_0, window_bounds = array<i64: 8, 32>}, {pipeline_mode = #tpu.pipeline_mode<synchronous>, transform_indices = @transform_1, window_bounds = array<i64: 32, 1>}, {transform_indices = @transform_2, window_bounds = array<i64: 1>}, {transform_indices = @transform_3, window_bounds = array<i64: 8, 1>}]} {
    %c0 = arith.constant 0 : index
    %c0_0 = arith.constant 0 : index
    %0 = vector.load %arg1[%c0, %c0_0] : memref<8x32xf32, #tpu.memory_space<vmem>>, vector<8x32xf32>
    %c0_1 = arith.constant 0 : index
    %c0_2 = arith.constant 0 : index
    %1 = vector.load %arg2[%c0_1, %c0_2] : memref<32x1xf32, #tpu.memory_space<vmem>>, vector<32x1xf32>
    %cst = arith.constant dense<0.000000e+00> : vector<8x1xf32>
    %2 = tpu.matmul %0, %1, %cst {dimension_numbers = #tpu.dot_dimension_numbers<[1], [0], [0], [1], [0, 0, 1, 1], [], []>} : vector<8x32xf32>, vector<32x1xf32>, vector<8x1xf32> -> vector<8x1xf32>
    %c0_3 = arith.constant 0 : index
    %3 = memref.load %arg3[%c0_3] : memref<1xf32, #tpu.memory_space<smem>>
    %4 = vector.broadcast %3 : f32 to vector<8x1xf32>
    %5 = arith.addf %2, %4 : vector<8x1xf32>
    %cst_4 = arith.constant 5.000000e-01 : f32
    %6 = vector.broadcast %cst_4 : f32 to vector<8x1xf32>
    %7 = arith.mulf %6, %5 : vector<8x1xf32>
    %8 = math.tanh %7 : vector<8x1xf32>
    %cst_5 = arith.constant 5.000000e-01 : f32
    %9 = vector.broadcast %cst_5 : f32 to vector<8x1xf32>
    %10 = arith.mulf %9, %8 : vector<8x1xf32>
    %cst_6 = arith.constant 5.000000e-01 : f32
    %11 = vector.broadcast %cst_6 : f32 to vector<8x1xf32>
    %12 = arith.addf %10, %11 : vector<8x1xf32>
    %c0_7 = arith.constant 0 : index
    %c0_8 = arith.constant 0 : index
    %13 = vector.load %arg4[%c0_7, %c0_8] : memref<8x1xf32, #tpu.memory_space<vmem>>, vector<8x1xf32>
    tpu.vector_store %arg4[%c0_7, %c0_8], %12 {strides = array<i32>} : memref<8x1xf32, #tpu.memory_space<vmem>>, vector<8x1xf32>,
    return
  }
  func.func @transform_0(%arg0: i32) -> (i32, i32) {
    %c0_i32 = arith.constant 0 : i32
    %c0_i32_0 = arith.constant 0 : i32
    return %arg0, %c0_i32 : i32, i32
  }
  func.func @transform_1(%arg0: i32) -> (i32, i32) {
    %c0_i32 = arith.constant 0 : i32
    %c0_i32_0 = arith.constant 0 : i32
    %c0_i32_1 = arith.constant 0 : i32
    return %c0_i32, %c0_i32_0 : i32, i32
  }
  func.func @transform_2(%arg0: i32) -> i32 {
    %c0_i32 = arith.constant 0 : i32
    %c0_i32_0 = arith.constant 0 : i32
    return %c0_i32 : i32
  }
  func.func @transform_3(%arg0: i32) -> (i32, i32) {
    %c0_i32 = arith.constant 0 : i32
    %c0_i32_0 = arith.constant 0 : i32
    return %arg0, %c0_i32 : i32, i32
  }
}

</mosaic_0001>

<bundles_post_ra>
// kernel: tpu_custom_call.1
= control target key start
LH: loop header
LB: loop body
LE: loop exit
PB: predicated region body
PF: predicated region fallthrough
CT: control target
= control target key end

     0   :  { %v134_v0 = vmov 0.0|0.0   ;;  %vm135_vm0 = vmmov 0   ;;  %v136_v4 = vmov 0.0   ;;  %vm22_vm1 = vcmask 261120   ;;  %s178_s1 = inlined_call_operand.vmem [shape: f32[32,1], index: 1, kind: input, shape index: {}]   ;;  %s179_s0 = inlined_call_operand.vmem [shape: f32[8,32], index: 0, kind: input, shape index: {}]   ;;  %s180_s2 = inlined_call_operand.<no memory space> [shape: f32[1], index: 2, kind: input, shape index: {}]   ;;  %s181_s3 = inlined_call_operand.vmem [shape: f32[8,1], index: 3, kind: output, shape index: {}]  }
   0x1   :  { %123 = vmatprep.subr.bf16.mxu0 %v134_v0  ;;  %v16_v1 = vld [vmem:[%s178_s1] sm:$0xff]  ;;  %v17_v2 = vld [vmem:[%s178_s1 + $0x8] sm:$0xff]  ;;  %v18_v3 = vld [vmem:[%s178_s1 + $0x10] sm:$0xff]  ;;  %120 = vmatprep.mubr.msk.f32.mxu0 %vm135_vm0, %v136_v4  ;;  %v21_v9 = vstv %s180_s2  ;;  %vm100_vm2 = vcmask 7168  }
   0x2   :  { %v124_v5 = vpack.c.bf16 %v17_v2, %v16_v1  ;;  %v19_v6 = vld [vmem:[%s178_s1 + $0x18] sm:$0xff]  ;;  %v15_v8 = vld [vmem:[%s179_s0] sm:$0xff] }
   0x3   :  { %v127_v7 = vpack.c.bf16 %v19_v6, %v18_v3 }
   0x4   :  { %125 = vmatpush3.bf16.msra.mxu0 %v124_v5 }
   0x5   :  { %126 = vmatprep.subr.bf16.mxu0 %v134_v0 }
   0x8   :  { %128 = vmatpush3.bf16.msra.mxu0 %v127_v7 }
   0xb   :  { %121 = vmatmul.mubr.msk.f32.vlgmr.msra.gmra.mrb[0].mxu0 %vm22_vm1, %v15_v8 }
  0xde   :  { %v92_v10 = vpop.f32.mrb[0].mxu0 }
  0xdf   :  { %v93_v11 = vadd.f32 %v92_v10, %v21_v9  ;;  %v122_v12 = vpop.f32.mrb[1].mxu0 }
  0xe1   :  { %v96_v13 = vmul.f32 0.5, %v93_v11 }
  0xe3   :  { %132 = vtanh.f32 %v96_v13 }
  0xed   :  { %v133_v14 = vpop.eup %132 }
  0xee   :  { %v98_v15 = vmul.f32 0.5, %v133_v14 }
  0xf0   :  { %v99_v16 = vadd.f32 0.5, %v98_v15 }
  0xf2   :  { %101 = vst.msk [vmem:[%s181_s3] sm:$0xff] %vm100_vm2, %v99_v16 }

</bundles_post_ra>
